<compile_context>
chip_gen: v7x
topology: tpu7x:2x2x1
jax: 0.10.0
libtpu: 0.0.40
codegen_flags: <defaults>
</compile_context>

<pallas_src>
import jax
import jax.numpy as jnp
from jax.experimental import pallas as pl
from jax.experimental.pallas import tpu as pltpu


_N_OUT_PAD = 8  # pad the (3, tile_n) output block to a full 8-sublane row


def _make_mlp_kernel(n_layers: int, n_out_pad: int):
    """Kernel for the packed tanh MLP.

    Ref layout (batch on lanes):
      x_ref: (1, tile_n)
      w_ref: (n_layers, H, H)   slabs 0..n_layers-2: hidden (H,H) weights,
                                slab n_layers-1: W_out zero-padded to (H,H)
      s_ref: (H, n_layers + 2)  col 0: W0 column; cols 1..n_layers: biases
                                b_0..b_{n_layers-1}; col n_layers+1: b_out
                                zero-padded to H rows
      o_ref: (n_out_pad, tile_n) rows 0..n_output-1 real, rest zeros
    """

    def kernel(x_ref, w_ref, s_ref, o_ref):
        cd = w_ref.dtype                       # compute dtype (f32 or bf16)
        x = x_ref[...].astype(cd)              # (1, T)
        w0 = s_ref[:, 0:1]                     # (H, 1)
        b0 = s_ref[:, 1:2]                     # (H, 1)

        # First layer: n_input == 1, so W0 @ x would be a degenerate K=1
        # matmul.  Use a pure VPU broadcast multiply instead.
        h = jnp.tanh(w0 * x + b0)              # (H, T), lane-dense

        # Hidden layers 1..n_layers-1: (H, H) MXU matmuls, f32 accumulation.
        for i in range(n_layers - 1):
            w = w_ref[i]                                           # (H, H)
            b = s_ref[:, 2 + i:3 + i].astype(jnp.float32)          # (H, 1)
            z = jnp.dot(w, h, preferred_element_type=jnp.float32) + b
            h = jnp.tanh(z.astype(cd))

        # Output layer: W_out is zero-padded to (H, H); keep only the first
        # n_out_pad rows so the store is a full unmasked vreg row.
        b_out = s_ref[0:n_out_pad, n_layers + 1:n_layers + 2].astype(jnp.float32)
        z = jnp.dot(w_ref[n_layers - 1], h, preferred_element_type=jnp.float32)
        o_ref[...] = (z[0:n_out_pad, :] + b_out).astype(o_ref.dtype)

    return kernel


def pack_bloch_nn_params(params, compute_dtype=jnp.float32, n_out_pad=_N_OUT_PAD):
    """Pack BlochNN parameters into the kernel's two parameter arrays."""
    hidden = params["hidden"]
    w_out, b_out = params["out"]
    n_hidden, n_input = hidden[0][0].shape
    n_output = w_out.shape[0]

    assert n_input == 1, "BlochNN fixes n_input == 1 (layer 0 is a VPU broadcast)"
    assert n_output <= n_out_pad <= n_hidden

    # (n_layers, H, H): hidden (H,H) weights, then W_out zero-padded to (H,H).
    w_out_pad = jnp.zeros((n_hidden, n_hidden), w_out.dtype).at[:n_output].set(w_out)
    w_stack = jnp.stack([w for (w, _) in hidden[1:]] + [w_out_pad])

    # (H, n_layers + 2): W0 column | b_0 .. b_{L-1} | b_out (zero-padded).
    b_out_col = jnp.zeros((n_hidden, 1), b_out.dtype).at[:n_output].set(
        b_out.reshape(n_output, 1))
    cols = [hidden[0][0].reshape(n_hidden, 1)]
    cols += [b.reshape(n_hidden, 1) for (_, b) in hidden]
    cols.append(b_out_col)
    small = jnp.concatenate(cols, axis=1)

    return w_stack.astype(compute_dtype), small.astype(compute_dtype)


def bloch_nn_forward(x, params, *, tile_n=512, compute_dtype=jnp.float32,
                     channels_major=False):
    """Run the BlochNN MLP forward pass with a Pallas TPU kernel.

    Args:
      x: (N, 1) float32 array of time samples.
      params: dict with "hidden": list of (W, b) [(out,in), (out,1)] tanh layers
              and "out": (W_out, b_out) [(3,H), (3,1)] final linear layer.
      tile_n: batch tile (lanes) per grid step; multiple of 128.  Single-TC
              chips (v5e/v6e) like few big steps; v7x likes an even step count.
      compute_dtype: jnp.float32 (default, all chips) or jnp.bfloat16
              (v6e/v7x: ~2x EUP tanh throughput, native MXU rate); matmuls
              always accumulate in f32 and the output is stored in x.dtype.
      channels_major: if True return (3, N) and skip the wrapper transpose.

    Returns:
      (N, 3) array (or (3, N) if channels_major).
    """
    N, n_input = x.shape
    assert n_input == 1, "BlochNN fixes n_input == 1"
    assert tile_n % 128 == 0, "tile_n must be a multiple of 128 (lane width)"

    hidden = params["hidden"]
    n_output = params["out"][0].shape[0]
    n_layers = len(hidden)

    # In production, pack once outside the training/eval loop.
    w_stack, small = pack_bloch_nn_params(params, compute_dtype)

    # Pad the batch to a multiple of tile_n; batch sits on the lane axis.
    # x.T of an (N, 1) array is effectively a reshape (no real transpose).
    n_pad = pl.cdiv(N, tile_n) * tile_n
    x_t = x.T                                     # (1, N)
    if n_pad != N:
        x_t = jnp.pad(x_t, ((0, 0), (0, n_pad - N)))

    grid = (n_pad // tile_n,)
    kernel = _make_mlp_kernel(n_layers, _N_OUT_PAD)

    out_t = pl.pallas_call(
        kernel,
        out_shape=jax.ShapeDtypeStruct((_N_OUT_PAD, n_pad), x.dtype),
        grid_spec=pltpu.PrefetchScalarGridSpec(
            num_scalar_prefetch=0,
            grid=grid,
            in_specs=[
                pl.BlockSpec((n_input, tile_n), lambda i: (0, i)),
                # Whole-array parameter blocks with constant index maps: the
                # pipeliner fetches them once (block index never changes).
                pl.BlockSpec(w_stack.shape, lambda i: (0, 0, 0)),
                pl.BlockSpec(small.shape, lambda i: (0, 0)),
            ],
            out_specs=pl.BlockSpec((_N_OUT_PAD, tile_n), lambda i: (0, i)),
        ),
        compiler_params=pltpu.CompilerParams(
            dimension_semantics=("parallel",),   # v7x: split batch over 2 TCs
        ),
    )(x_t, w_stack, small)

    out = out_t[:n_output]
    if channels_major:
        return out[:, :N]                        # (3, N), no wrapper transpose
    return out[:, :N].T                          # (N, 3), PyTorch layout


def init_bloch_nn_params(key, n_input, n_output, n_hidden, n_layers):
    """Init mimicking nn.Linear's U(-1/sqrt(fan_in), 1/sqrt(fan_in)).

    Weights in PyTorch's (out, in) orientation; biases as (out, 1) columns.
    """

    def linear_init(k, fan_in, fan_out):
        kw, kb = jax.random.split(k)
        bound = 1.0 / jnp.sqrt(jnp.float32(fan_in))
        w = jax.random.uniform(kw, (fan_out, fan_in), jnp.float32, -bound, bound)
        b = jax.random.uniform(kb, (fan_out, 1), jnp.float32, -bound, bound)
        return w, b

    keys = jax.random.split(key, n_layers + 1)
    hidden = [linear_init(keys[0], n_input, n_hidden)]          # fcs
    for li in range(n_layers - 1):                              # fch
        hidden.append(linear_init(keys[1 + li], n_hidden, n_hidden))
    out = linear_init(keys[n_layers], n_hidden, n_output)       # fce
    return {"hidden": hidden, "out": out}


def bloch_nn_ref(x, params):
    """Pure-JAX reference (PyTorch convention: y = x @ W.T + b)."""
    h = x
    for (w, b) in params["hidden"]:
        h = jnp.tanh(h @ w.T + b.T)
    w_out, b_out = params["out"]
    return h @ w_out.T + b_out.T


if __name__ == "__main__":
    # Module shapes: n_input=1 (time), n_output=3 (Bloch vector), n_hidden=32,
    # n_layers=3.  Batch 1024 with tile_n=512 -> grid=(2,): two big steps that
    # amortize pipeline overhead on v5e/v6e and keep both v7x TCs busy.
    n_input, n_output, n_hidden, n_layers = 1, 3, 32, 3
    batch = 1024
    tile_n = 512

    key = jax.random.PRNGKey(0)
    k_params, k_x = jax.random.split(key)

    params = init_bloch_nn_params(k_params, n_input, n_output, n_hidden, n_layers)
    x = jax.random.uniform(k_x, (batch, n_input), jnp.float32)

    ref = bloch_nn_ref(x, params)

    # float32 path (default; strict PINN accuracy, safe on every generation).
    out = jax.block_until_ready(bloch_nn_forward(x, params, tile_n=tile_n))
    assert out.shape == (batch, n_output)
    assert jnp.allclose(out, ref, atol=1e-5, rtol=1e-5), "f32 mismatch vs reference"

    # bf16 activation path (the per-tile compute win on v6e/v7x); looser check.
    out_bf16 = jax.block_until_ready(
        bloch_nn_forward(x, params, tile_n=tile_n, compute_dtype=jnp.bfloat16))
    assert jnp.allclose(out_bf16, ref, atol=5e-2, rtol=5e-2), "bf16 mismatch vs reference"

    print("KERNEL_OK")
</pallas_src>

<mosaic_0001>
module attributes {stable_mosaic.version = 11 : i64} {
  func.func @kernel(%arg0: i32, %arg1: memref<1x512xf32, #tpu.memory_space<vmem>>, %arg2: memref<3x32x32xf32, #tpu.memory_space<vmem>>, %arg3: memref<32x5xf32, #tpu.memory_space<vmem>>, %arg4: memref<8x512xf32, #tpu.memory_space<vmem>>) attributes {dimension_semantics = [#tpu.dimension_semantics<parallel>], iteration_bounds = array<i64: 2>, scalar_prefetch = 0 : i64, scratch_operands = 0 : i64, tpu.core_type = #tpu.core_type<tc>, window_params = [{transform_indices = @transform_0, window_bounds = array<i64: 1, 512>}, {pipeline_mode = #tpu.pipeline_mode<synchronous>, transform_indices = @transform_1, window_bounds = array<i64: 3, 32, 32>}, {pipeline_mode = #tpu.pipeline_mode<synchronous>, transform_indices = @transform_2, window_bounds = array<i64: 32, 5>}, {transform_indices = @transform_3, window_bounds = array<i64: 8, 512>}]} {
    %c0 = arith.constant 0 : index
    %c0_0 = arith.constant 0 : index
    %0 = vector.load %arg1[%c0, %c0_0] : memref<1x512xf32, #tpu.memory_space<vmem>>, vector<1x512xf32>
    %c0_1 = arith.constant 0 : index
    %c0_2 = arith.constant 0 : index
    %1 = vector.load %arg3[%c0_1, %c0_2] : memref<32x5xf32, #tpu.memory_space<vmem>>, vector<32x1xf32>
    %c0_3 = arith.constant 0 : index
    %c1 = arith.constant 1 : index
    %2 = vector.load %arg3[%c0_3, %c1] : memref<32x5xf32, #tpu.memory_space<vmem>>, vector<32x1xf32>
    %3 = vector.broadcast %1 : vector<32x1xf32> to vector<32x512xf32>
    %4 = vector.broadcast %0 : vector<1x512xf32> to vector<32x512xf32>
    %5 = arith.mulf %3, %4 : vector<32x512xf32>
    %6 = vector.broadcast %2 : vector<32x1xf32> to vector<32x512xf32>
    %7 = arith.addf %5, %6 : vector<32x512xf32>
    %8 = math.tanh %7 : vector<32x512xf32>
    %c0_4 = arith.constant 0 : index
    %c0_5 = arith.constant 0 : index
    %c0_6 = arith.constant 0 : index
    %9 = vector.load %arg2[%c0_4, %c0_5, %c0_6] : memref<3x32x32xf32, #tpu.memory_space<vmem>>, vector<1x32x32xf32>
    %10 = vector.shape_cast %9 : vector<1x32x32xf32> to vector<32x32xf32>
    %c0_7 = arith.constant 0 : index
    %c2 = arith.constant 2 : index
    %11 = vector.load %arg3[%c0_7, %c2] : memref<32x5xf32, #tpu.memory_space<vmem>>, vector<32x1xf32>
    %cst = arith.constant dense<0.000000e+00> : vector<32x512xf32>
    %12 = tpu.matmul %10, %8, %cst {dimension_numbers = #tpu.dot_dimension_numbers<[1], [0], [0], [1], [0, 0, 1, 1], [], []>} : vector<32x32xf32>, vector<32x512xf32>, vector<32x512xf32> -> vector<32x512xf32>
    %13 = vector.broadcast %11 : vector<32x1xf32> to vector<32x512xf32>
    %14 = arith.addf %12, %13 : vector<32x512xf32>
    %15 = math.tanh %14 : vector<32x512xf32>
    %c1_8 = arith.constant 1 : index
    %c0_9 = arith.constant 0 : index
    %c0_10 = arith.constant 0 : index
    %16 = vector.load %arg2[%c1_8, %c0_9, %c0_10] : memref<3x32x32xf32, #tpu.memory_space<vmem>>, vector<1x32x32xf32>
    %17 = vector.shape_cast %16 : vector<1x32x32xf32> to vector<32x32xf32>
    %c0_11 = arith.constant 0 : index
    %c3 = arith.constant 3 : index
    %18 = vector.load %arg3[%c0_11, %c3] : memref<32x5xf32, #tpu.memory_space<vmem>>, vector<32x1xf32>
    %cst_12 = arith.constant dense<0.000000e+00> : vector<32x512xf32>
    %19 = tpu.matmul %17, %15, %cst_12 {dimension_numbers = #tpu.dot_dimension_numbers<[1], [0], [0], [1], [0, 0, 1, 1], [], []>} : vector<32x32xf32>, vector<32x512xf32>, vector<32x512xf32> -> vector<32x512xf32>
    %20 = vector.broadcast %18 : vector<32x1xf32> to vector<32x512xf32>
    %21 = arith.addf %19, %20 : vector<32x512xf32>
    %22 = math.tanh %21 : vector<32x512xf32>
    %c0_13 = arith.constant 0 : index
    %c4 = arith.constant 4 : index
    %23 = vector.load %arg3[%c0_13, %c4] : memref<32x5xf32, #tpu.memory_space<vmem>>, vector<8x1xf32>
    %c2_14 = arith.constant 2 : index
    %c0_15 = arith.constant 0 : index
    %c0_16 = arith.constant 0 : index
    %24 = vector.load %arg2[%c2_14, %c0_15, %c0_16] : memref<3x32x32xf32, #tpu.memory_space<vmem>>, vector<1x32x32xf32>
    %25 = vector.shape_cast %24 : vector<1x32x32xf32> to vector<32x32xf32>
    %cst_17 = arith.constant dense<0.000000e+00> : vector<32x512xf32>
    %26 = tpu.matmul %25, %22, %cst_17 {dimension_numbers = #tpu.dot_dimension_numbers<[1], [0], [0], [1], [0, 0, 1, 1], [], []>} : vector<32x32xf32>, vector<32x512xf32>, vector<32x512xf32> -> vector<32x512xf32>
    %27 = vector.extract_strided_slice %26 {offsets = [0, 0], sizes = [8, 512], strides = [1, 1]} : vector<32x512xf32> to vector<8x512xf32>
    %28 = vector.broadcast %23 : vector<8x1xf32> to vector<8x512xf32>
    %29 = arith.addf %27, %28 : vector<8x512xf32>
    %c0_18 = arith.constant 0 : index
    %c0_19 = arith.constant 0 : index
    %30 = vector.load %arg4[%c0_18, %c0_19] : memref<8x512xf32, #tpu.memory_space<vmem>>, vector<8x512xf32>
    tpu.vector_store %arg4[%c0_18, %c0_19], %29 {strides = array<i32>} : memref<8x512xf32, #tpu.memory_space<vmem>>, vector<8x512xf32>,
    return
  }
  func.func @transform_0(%arg0: i32) -> (i32, i32) {
    %c0_i32 = arith.constant 0 : i32
    %c0_i32_0 = arith.constant 0 : i32
    return %c0_i32, %arg0 : i32, i32
  }
  func.func @transform_1(%arg0: i32) -> (i32, i32, i32) {
    %c0_i32 = arith.constant 0 : i32
    %c0_i32_0 = arith.constant 0 : i32
    %c0_i32_1 = arith.constant 0 : i32
    %c0_i32_2 = arith.constant 0 : i32
    return %c0_i32, %c0_i32_0, %c0_i32_1 : i32, i32, i32
  }
  func.func @transform_2(%arg0: i32) -> (i32, i32) {
    %c0_i32 = arith.constant 0 : i32
    %c0_i32_0 = arith.constant 0 : i32
    %c0_i32_1 = arith.constant 0 : i32
    return %c0_i32, %c0_i32_0 : i32, i32
  }
  func.func @transform_3(%arg0: i32) -> (i32, i32) {
    %c0_i32 = arith.constant 0 : i32
    %c0_i32_0 = arith.constant 0 : i32
    return %c0_i32, %arg0 : i32, i32
  }
}

</mosaic_0001>

<bundles_post_ra>
// kernel: tpu_custom_call.1
= control target key start
LH: loop header
LB: loop body
LE: loop exit
PB: predicated region body
PF: predicated region fallthrough
CT: control target
= control target key end

     0   :  { %8 = vsyncpa [#allocation3], 0  ;;  %s1624_s0 = inlined_call_operand.vmem [shape: f32[1,1024], index: 0, kind: input, shape index: {}]   ;;  %s1625_s1 = inlined_call_operand.hbm [shape: f32[3,32,32], index: 1, kind: input, shape index: {}]   ;;  %s1626_s2 = inlined_call_operand.vmem [shape: f32[32,5], index: 2, kind: input, shape index: {}]   ;;  %s1627_s3 = inlined_call_operand.hbm [shape: f32[8,1024], index: 3, kind: output, shape index: {}]  }
   0x1   :  { %9 = vsyncpa [#allocation4], 0 }
   0x2   :  { %11 = vsyncpa [#allocation4 + $0x1], 0  ;;  %s1405_s12 = smov 0   ;;  %s1407_s13 = smov 0  }
   0x3   :  { %s1409_s14 = smov 0   ;;  %s1411_s15 = smov 0  }
   0x4 LB: > { %s1426_s16 = sadd.s32 4294967295, %s1373_s15   ;;  %s1028_s17 = sadd.s32 4294967294, %s1373_s15   ;;  %s1373_s15 = sphi %s1411_s15, %s1643_s15   ;;  %s1369_s14 = sphi %s1409_s14, %s1642_s14   ;;  %s1365_s13 = sphi %s1407_s13, %s1641_s13   ;;  %s1361_s12 = sphi %s1405_s12, %s1640_s12  }
   0x5   : > { %s1430_s18 = sadd.s32 1, %s1373_s15   ;;  %s92_s19 = sadd.s32 1, %s1369_s14 }
   0x6   : > { %s89_s20 = ssub.s32 %s1373_s15, %s1430_s18  ;;  %p102_p0 = scmp.ne.s32.totalorder %s1369_s14, %s1365_s13 }
   0x7   : > { %p90_p1 = scmp.eq.s32.totalorder %s89_s20, 0  ;;  %p103_p2 = scmp.eq.s32.totalorder %s1426_s16, 1 }
   0x8   : > { %p108_p3 = scmp.ne.s32.totalorder %s1365_s13, %s1361_s12  ;;  %p109_p4 = scmp.eq.s32.totalorder %s1028_s17, 1 }
   0x9   : > { %s1441_s21 = scalar_select %p90_p1, %s1369_s14, %s92_s19  }
   0xa   : > { %p1443_p5 = por %p103_p2, %p102_p0  ;;  %p1447_p6 = por %p109_p4, %p108_p3 }
   0xb   : > { %p1029_p7 = scmp.ge.s32.totalorder %s1373_s15, 1  ;;  %p116_p8 = scmp.lt.s32.totalorder %s1373_s15, 3 }
   0xc   : > { %s1631_s22 = scalar_select %p1443_p5, 1, 0 }
   0xd   : > { %s1632_s23 = scalar_select %p1447_p6, 1, 0 }
   0xe   : > { %p1628_p9 = scmp.eq.s32.totalorder %s1426_s16, 0  ;;  %p1454_p10 = pnand %p1029_p7, %p116_p8 }
   0xf   : > { %s1375_s25 = smov [#allocation2]   ;;  %s1279_s30 = scalar_lea.hbm %s1625_s1, 1536 }
  0x10   : > { %s1633_s24 = scalar_select %p1454_p10, 1, 0 }
  0x11   : > { %s128_s26 = sshll.u32 %s1375_s25, 4  ;;  %p1120_p11 = pneg %p1454_p10  ;;  %s129_s26 = int_to_ptr.vmem [resolvable:$true] %s128_s26 }
  0x12   : > { %p1280_p13 = scmp.ne.s32.totalorder %s1625_s1, %s1279_s30  ;;  %p1286_p3 = scmp.lt.u32.totalorder %s1279_s30, %s1625_s1 }
  0x13   : > { %p1462_p12 = pnand %p1628_p9, %p1120_p11 }
  0x15   : > { %p1281_p0 = pneg %p1462_p12 }
  0x17   : > { %p1282_p1 = pnand %p1281_p0, %p1280_p13 }
  0x19   : > { %p1283_p2 = pneg %p1282_p1 }
  0x1b   : > { %p1288_p4 = pnand %p1286_p3, %p1283_p2 }
  0x1d   : > { %1291 = shalt.err (!%p1288_p4)
}
  0x1e   : > { %s1292_s8 = scalar_lea.vmem %s129_s26, 1536  ;;  %p1300_p9 = scmp.lt.s32.totalorder %s129_s26, %s129_s26 }
  0x1f   : > { %p1293_p7 = scmp.ne.s32.totalorder %s129_s26, %s1292_s8  ;;  %p1301_p6 = scmp.lt.s32.totalorder %s1292_s8, %s1292_s8 }
  0x21   : > { %p1295_p8 = pnand %p1293_p7, %p1281_p0  ;;  %p1302_p5 = por %p1301_p6, %p1300_p9 }
  0x23   : > { %p1296_p11 = pneg %p1295_p8 }
  0x25   : > { %p1303_p10 = pnand %p1302_p5, %p1296_p11 }
  0x27   : > { %1306 = shalt.err (!%p1303_p10)
}
  0x28   : > { %s1376_s9 = smov 128   ;;  %s1377_s10 = smov 8  }
  0x29   : > { %1123 = dma.hbm_to_vmem [thread:$0]  (!%p1462_p12), %s1625_s1, 1536, %s129_s26, [#allocation3], %s1376_s9, %s1376_s9, %s1377_s10  }
  0x2a   : > { %p1635_p13 = scmp.ne.s32.totalorder %s1633_s24, 0 }
  0x2b   : > { %p1636_p1 = scmp.eq.s32.totalorder (!%p1635_p13), %s1426_s16, 0 }
  0x2c   : > { %155 = sbr.rel (%p1635_p13) target bundleno = 942 (0x3ae), region = 32 }
  0x33   : > { %1352 = dma.done.wait (%p1636_p1), [#allocation3], 1536   ;;  %p1637_p0 = pmov %p1636_p1 }
  0x34   : > { %v1378_v0 = vmov 1   ;;  %v1379_v1 = vmov 0   ;;  %v1491_v2 = vld [vmem:[%s1626_s2] sm:$0xff]  ;;  %v1498_v3 = vld [vmem:[%s1626_s2 + $0x8] sm:$0xff]  ;;  %v1505_v4 = vld [vmem:[%s1626_s2 + $0x10] sm:$0xff]  ;;  %v1380_v6 = vmov 0.0   ;;  %v210_v8 = vlaneseq }
  0x35   : > { %1354 = vsyncadd (%p1637_p0), [#allocation3], 4294965760  ;;  %1173 = vset.pattern.permute.xlu1 %v1378_v0  ;;  %1172 = vset.pattern.permute.xlu0 %v1379_v1  ;;  %v1510_v5 = vld [vmem:[%s1626_s2 + $0x18] sm:$0xff]  ;;  %v1381_v7 = vmov 2   ;;  %s1035_s30 = sshll.u32 %s1426_s16, 2  ;;  %vm314_vm0 = vcmask 261120  }
  0x36   : > { %247 = vperm.xlu1 %1173, %v1491_v2   ;;  %191 = vperm.xlu0 %1172, %v1491_v2   ;;  %p179_p5 = scmp.lt.s32.totalorder %s1035_s30, 7  ;;  %v211_v9 = vshrl.u32 %v210_v8, 7  ;;  %s175_s7 = sand.u32 1, %s1365_s13  }
  0x37   : > { %391 = vmatprep.mubr.f32.mxu0 %v1380_v6  ;;  %480 = vmatprep.mubr.f32.mxu1 %v1380_v6  ;;  %s1034_s8 = sshll.u32 %s175_s7, 5  ;;  %s1065_s9 = sshll.u32 %s1426_s16, 9 }
  0x38   : > { %s1645_s30 = smov (!%p179_p5, %s1035_s30), 7  ;;  %v212_v10 = vsub.s32 0, %v211_v9  ;;  %v216_v11 = vsub.s32 1, %v211_v9  ;;  %v220_v12 = vsub.s32 2, %v211_v9  ;;  %v224_v13 = vsub.s32 3, %v211_v9  ;;  %s177_s10 = scalar_lea.vmem [#allocation5], %s1034_s8 }
  0x39   : > { %s181_s6 = scalar_lea.vmem %s1624_s0, %s1645_s30  ;;  %s960_s11 = sshll.u32 %s177_s10, 4  ;;  %s1584_s11 = int_to_ptr.vmem [resolvable:$true] %s960_s11 }
  0x3a   : > { %251 = vperm.xlu1 %1173, %v1498_v3   ;;  %196 = vperm.xlu0 %1172, %v1498_v3   ;;  %v184_v14 = vld [vmem:[%s181_s6] sm:$0xf]  ;;  %s1582_s20 = scalar_lea.hbm %s1627_s3, %s1065_s9  ;;  %s946_s16 = scalar_lea.sflag [#allocation4], %s175_s7 }
  0x3b   : > { %v213_v15 = vrot.slane %v184_v14, %v212_v10  ;;  %v217_v16 = vrot.slane %v184_v14, %v216_v11  ;;  %v221_v17 = vrot.slane %v184_v14, %v220_v12  ;;  %v225_v18 = vrot.slane %v184_v14, %v224_v13  ;;  %s1307_s24 = scalar_lea.vmem %s1584_s11, 512  ;;  %p1638_p9 = scmp.ne.s32.totalorder %s1631_s22, 0 }
  0x3c   : > { %p1308_p6 = scmp.ne.s32.totalorder %s1584_s11, %s1307_s24  ;;  %s1384_s25 = smov [#allocation5]  }
  0x3d   : > { %s1311_s26 = sshll.u32 %s1384_s25, 4  ;;  %s1312_s26 = int_to_ptr.vmem [resolvable:$false] %s1311_s26 }
  0x3e   : > { %1174 = vset.pattern.permute.xlu1 %v1379_v1  ;;  %201 = vperm.xlu0 %1172, %v1505_v4   ;;  %p1309_p10 = pnand %p1308_p6, %p1638_p9  ;;  %s1313_s27 = scalar_lea.vmem %s1312_s26, 1024 }
  0x3f   : > { %206 = vperm.xlu1 %1174, %v1510_v5   ;;  %p1314_p2 = scmp.lt.s32.totalorder %s1584_s11, %s1312_s26  ;;  %p1315_p3 = scmp.lt.s32.totalorder %s1313_s27, %s1307_s24 }
  0x40   : > { %p1310_p12 = pneg %p1309_p10 }
  0x41   : > { %p1316_p4 = por %p1315_p3, %p1314_p2 }
  0x42   : > { %1175 = vset.pattern.permute.xlu0 %v1378_v0 }
  0x43   : > { %1176 = vset.pattern.permute.xlu1 %v1378_v0  ;;  %255 = vperm.xlu0 %1175, %v1505_v4   ;;  %p1317_p7 = pnand %p1316_p4, %p1310_p12 }
  0x44   : > { %259 = vperm.xlu1 %1176, %v1510_v5  }
  0x47   : > { %1178 = vset.pattern.permute.xlu0 %v1381_v7 }
  0x48   : > { %1177 = vset.pattern.permute.xlu1 %v1381_v7  ;;  %303 = vperm.xlu0 %1178, %v1498_v3  }
  0x49   : > { %299 = vperm.xlu1 %1177, %v1491_v2  }
  0x4d   : > { %307 = vperm.xlu1 %1177, %v1505_v4  }
  0x51   : > { %311 = vperm.xlu1 %1177, %v1510_v5  }
  0xb5   : > { %v248_v19 = vpop.permute.xlu1 %247  ;;  %v192_v20 = vpop.permute.xlu0 %191 }
  0xb6   : > { %v230_v21 = vmul.f32 %v213_v15, %v192_v20  ;;  %v231_v22 = vmul.f32 %v217_v16, %v192_v20  ;;  %v232_v23 = vmul.f32 %v221_v17, %v192_v20  ;;  %v233_v24 = vmul.f32 %v225_v18, %v192_v20 }
  0xb8   : > { %v262_v25 = vadd.f32 %v248_v19, %v230_v21  ;;  %v263_v26 = vadd.f32 %v248_v19, %v231_v22  ;;  %v264_v27 = vadd.f32 %v248_v19, %v232_v23  ;;  %v265_v28 = vadd.f32 %v248_v19, %v233_v24  ;;  %v294_v24 = vld [vmem:[#allocation2] sm:$0xff] }
  0xb9   : > { %v252_v29 = vpop.permute.xlu1 %251  ;;  %v197_v30 = vpop.permute.xlu0 %196 }
  0xba   : > { %1183 = vtanh.f32 %v262_v25  ;;  %v234_v31 = vmul.f32 %v213_v15, %v197_v30  ;;  %v235_v32 = vmul.f32 %v217_v16, %v197_v30  ;;  %v236_v33 = vmul.f32 %v221_v17, %v197_v30  ;;  %v295_v25 = vld [vmem:[#allocation2 + $0x8] sm:$0xff] }
  0xbb   : > { %1185 = vtanh.f32 %v263_v26  ;;  %v237_v34 = vmul.f32 %v225_v18, %v197_v30  ;;  %v296_v26 = vld [vmem:[#allocation2 + $0x10] sm:$0xff] }
  0xbc   : > { %1187 = vtanh.f32 %v264_v27  ;;  %v266_v35 = vadd.f32 %v252_v29, %v234_v31  ;;  %v267_v36 = vadd.f32 %v252_v29, %v235_v32  ;;  %v268_v37 = vadd.f32 %v252_v29, %v236_v33  ;;  %v297_v27 = vld [vmem:[#allocation2 + $0x18] sm:$0xff] }
  0xbd   : > { %1189 = vtanh.f32 %v265_v28  ;;  %v269_v38 = vadd.f32 %v252_v29, %v237_v34  ;;  %v202_v39 = vpop.permute.xlu0 %201  ;;  %v1382_v28 = vmov 3  }
  0xbe   : > { %1191 = vtanh.f32 %v266_v35  ;;  %v207_v40 = vpop.permute.xlu1 %206  ;;  %v238_v41 = vmul.f32 %v213_v15, %v202_v39  ;;  %v239_v42 = vmul.f32 %v217_v16, %v202_v39  ;;  %v240_v43 = vmul.f32 %v221_v17, %v202_v39  ;;  %1179 = vset.pattern.permute.xlu0 %v1382_v28  ;;  %1180 = vset.pattern.permute.xlu1 %v1382_v28  ;;  %v523_v28 = vld [vmem:[#allocation2 + $0x28] sm:$0xff] }
  0xbf   : > { %1193 = vtanh.f32 %v267_v36  ;;  %v241_v44 = vmul.f32 %v225_v18, %v202_v39  ;;  %v242_v46 = vmul.f32 %v213_v15, %v207_v40  ;;  %v243_v52 = vmul.f32 %v217_v16, %v207_v40  ;;  %527 = vperm.xlu0 %1179, %v1491_v2   ;;  %531 = vperm.xlu1 %1180, %v1498_v3  }
  0xc0   : > { %1195 = vtanh.f32 %v268_v37  ;;  %v244_v55 = vmul.f32 %v221_v17, %v207_v40  ;;  %v245_v58 = vmul.f32 %v225_v18, %v207_v40 }
  0xc1   : > { %1197 = vtanh.f32 %v269_v38 }
  0xc2   : > { %v256_v45 = vpop.permute.xlu0 %255 }
  0xc3   : > { %v270_v47 = vadd.f32 %v256_v45, %v238_v41  ;;  %v271_v48 = vadd.f32 %v256_v45, %v239_v42  ;;  %v272_v49 = vadd.f32 %v256_v45, %v240_v43  ;;  %v260_v50 = vpop.permute.xlu1 %259  ;;  %v273_v53 = vadd.f32 %v256_v45, %v241_v44  ;;  %535 = vperm.xlu1 %1180, %v1505_v4  }
  0xc4   : > { %v1184_v51 = vpop.eup %1183  ;;  %v274_v56 = vadd.f32 %v260_v50, %v242_v46  ;;  %v275_v59 = vadd.f32 %v260_v50, %v243_v52  ;;  %v276_v61 = vadd.f32 %v260_v50, %v244_v55  ;;  %v277_v63 = vadd.f32 %v260_v50, %v245_v58  ;;  %539 = vperm.xlu0 %1179, %v1510_v5  }
  0xc5   : > { %v1186_v54 = vpop.eup %1185  ;;  %1199 = vtanh.f32 %v270_v47 }
  0xc6   : > { %v1188_v57 = vpop.eup %1187  ;;  %1201 = vtanh.f32 %v271_v48 }
  0xc7   : > { %v1190_v60 = vpop.eup %1189  ;;  %1203 = vtanh.f32 %v272_v49  ;;  %v304_v35 = vpop.permute.xlu0 %303 }
  0xc8   : > { %v1192_v62 = vpop.eup %1191  ;;  %1205 = vtanh.f32 %v273_v53  ;;  %v300_v29 = vpop.permute.xlu1 %299 }
  0xc9   : > { %v1194_v0 = vpop.eup %1193  ;;  %1207 = vtanh.f32 %v274_v56  ;;  %v1068_v1 = vpack.c.bf16 %v1192_v62, %v1184_v51 }
  0xca   : > { %v1196_v7 = vpop.eup %1195  ;;  %1209 = vtanh.f32 %v275_v59  ;;  %v1066_v8 = vpack.c.bf16 %v1194_v0, %v1186_v54 }
  0xcb   : > { %v1198_v9 = vpop.eup %1197  ;;  %1211 = vtanh.f32 %v276_v61  ;;  %v1076_v10 = vpack.c.bf16 %v1196_v7, %v1188_v57 }
  0xcc   : > { %1213 = vtanh.f32 %v277_v63  ;;  %1067 = vmatprep.subr.bf16.mxu0 %v1066_v8  ;;  %v1074_v11 = vpack.c.bf16 %v1198_v9, %v1190_v60  ;;  %v308_v41 = vpop.permute.xlu1 %307 }
  0xcd   : > { %1069 = vmatpush1.bf16.msra.mxu0 %v1068_v1 }
  0xce   : > { %1075 = vmatprep.subr.bf16.mxu1 %v1074_v11 }
  0xcf   : > { %v1200_v12 = vpop.eup %1199  ;;  %1077 = vmatpush1.bf16.msra.mxu1 %v1076_v10 }
  0xd0   : > { %v1202_v13 = vpop.eup %1201  ;;  %v312_v52 = vpop.permute.xlu1 %311 }
  0xd1   : > { %v1204_v14 = vpop.eup %1203 }
  0xd2   : > { %v1206_v15 = vpop.eup %1205 }
  0xd3   : > { %v1208_v16 = vpop.eup %1207 }
  0xd4   : > { %v1210_v17 = vpop.eup %1209  ;;  %v1072_v18 = vpack.c.bf16 %v1208_v16, %v1200_v12 }
  0xd5   : > { %v1212_v19 = vpop.eup %1211  ;;  %v1070_v20 = vpack.c.bf16 %v1210_v17, %v1202_v13 }
  0xd6   : > { %v1214_v21 = vpop.eup %1213  ;;  %v1080_v22 = vpack.c.bf16 %v1212_v19, %v1204_v14 }
  0xd7   : > { %1071 = vmatprep.subr.bf16.mxu0 %v1070_v20  ;;  %v1078_v23 = vpack.c.bf16 %v1214_v21, %v1206_v15 }
  0xd8   : > { %1073 = vmatpush1.bf16.msra.mxu0 %v1072_v18 }
  0xd9   : > { %1079 = vmatprep.subr.bf16.mxu1 %v1078_v23 }
  0xda   : > { %1081 = vmatpush1.bf16.msra.mxu1 %v1080_v22 }
  0xdb   : > { %1036 = vmatmul.mubr.msk.f32.vlgmr.msra.gmra.mrb[0].mxu0 %vm314_vm0, %v294_v24 }
  0xdc   : > { %397 = vmatprep.mubr.f32.mxu0 %v1380_v6 }
  0xdd   : > { %1040 = vmatmul.mubr.msk.f32.vlgmr.msra.gmra.mrb[0].mxu1 %vm314_vm0, %v294_v24 }
  0xde   : > { %486 = vmatprep.mubr.f32.mxu1 %v1380_v6 }
  0xdf   : > { %1037 = vmatmul.mubr.msk.f32.gmra.mrb[2].mxu0 %vm314_vm0, %v295_v25 }
  0xe0   : > { %403 = vmatprep.mubr.f32.mxu0 %v1380_v6 }
  0xe1   : > { %1041 = vmatmul.mubr.msk.f32.gmra.mrb[2].mxu1 %vm314_vm0, %v295_v25 }
  0xe2   : > { %492 = vmatprep.mubr.f32.mxu1 %v1380_v6 }
  0xe3   : > { %1038 = vmatmul.mubr.msk.f32.gmra.mrb[4].mxu0 %vm314_vm0, %v296_v26 }
  0xe4   : > { %409 = vmatprep.mubr.f32.mxu0 %v1380_v6 }
  0xe5   : > { %1042 = vmatmul.mubr.msk.f32.gmra.mrb[4].mxu1 %vm314_vm0, %v296_v26 }
  0xe6   : > { %498 = vmatprep.mubr.f32.mxu1 %v1380_v6 }
  0xe7   : > { %1039 = vmatmul.mubr.msk.f32.gmra.mrb[6].mxu0 %vm314_vm0, %v297_v27 }
  0xe8   : > { %618 = vmatprep.mubr.f32.mxu0 %v1380_v6 }
  0xe9   : > { %1043 = vmatmul.mubr.msk.f32.gmra.mrb[6].mxu1 %vm314_vm0, %v297_v27  ;;  %v522_v27 = vld [vmem:[#allocation2 + $0x20] sm:$0xff] }
  0xea   : > { %707 = vmatprep.mubr.f32.mxu1 %v1380_v6 }
 0x1ae   : > { %v393_v30 = vpop.f32.mrb[0].mxu0 }
 0x1af   : > { %v394_v31 = vadd.f32 %v393_v30, %v300_v29  ;;  %v395_v32 = vpop.f32.mrb[1].mxu0  ;;  %v525_v30 = vld [vmem:[#allocation2 + $0x38] sm:$0xff] }
 0x1b0   : > { %v482_v33 = vpop.f32.mrb[0].mxu1  ;;  %v396_v34 = vadd.f32 %v395_v32, %v300_v29  ;;  %v528_v32 = vpop.permute.xlu0 %527 }
 0x1b1   : > { %1215 = vtanh.f32 %v394_v31  ;;  %v483_v36 = vadd.f32 %v482_v33, %v300_v29  ;;  %v484_v37 = vpop.f32.mrb[1].mxu1  ;;  %v1383_v31 = vmov 4  }
 0x1b2   : > { %1217 = vtanh.f32 %v396_v34  ;;  %v485_v38 = vadd.f32 %v484_v37, %v300_v29  ;;  %v399_v39 = vpop.f32.mrb[2].mxu0  ;;  %v524_v29 = vld [vmem:[#allocation2 + $0x30] sm:$0xff]  ;;  %1181 = vset.pattern.permute.xlu1 %v1383_v31  ;;  %1182 = vset.pattern.permute.xlu0 %v1383_v31  ;;  %v532_v34 = vpop.permute.xlu1 %531 }
 0x1b3   : > { %1219 = vtanh.f32 %v483_v36  ;;  %v400_v40 = vadd.f32 %v399_v39, %v304_v35  ;;  %v401_v3 = vpop.f32.mrb[3].mxu0  ;;  %934 = vperm.xlu1 %1181, %v1491_v2   ;;  %v752_v31 = vld [vmem:[#allocation2 + $0x50] sm:$0xff] }
 0x1b4   : > { %1221 = vtanh.f32 %v485_v38  ;;  %v488_v4 = vpop.f32.mrb[2].mxu1  ;;  %v402_v5 = vadd.f32 %v401_v3, %v304_v35 }
 0x1b5   : > { %1223 = vtanh.f32 %v400_v40  ;;  %v489_v42 = vadd.f32 %v488_v4, %v304_v35  ;;  %v490_v43 = vpop.f32.mrb[3].mxu1 }
 0x1b6   : > { %1225 = vtanh.f32 %v402_v5  ;;  %v491_v44 = vadd.f32 %v490_v43, %v304_v35  ;;  %v405_v45 = vpop.f32.mrb[4].mxu0  ;;  %v536_v43 = vpop.permute.xlu1 %535 }
 0x1b7   : > { %1227 = vtanh.f32 %v489_v42  ;;  %v406_v46 = vadd.f32 %v405_v45, %v308_v41  ;;  %v407_v47 = vpop.f32.mrb[5].mxu0 }
 0x1b8   : > { %1229 = vtanh.f32 %v491_v44  ;;  %v494_v48 = vpop.f32.mrb[4].mxu1  ;;  %v408_v49 = vadd.f32 %v407_v47, %v308_v41 }
 0x1b9   : > { %1231 = vtanh.f32 %v406_v46  ;;  %v495_v50 = vadd.f32 %v494_v48, %v308_v41  ;;  %v496_v51 = vpop.f32.mrb[5].mxu1 }
 0x1ba   : > { %1233 = vtanh.f32 %v408_v49  ;;  %v497_v53 = vadd.f32 %v496_v51, %v308_v41  ;;  %v411_v54 = vpop.f32.mrb[6].mxu0 }
 0x1bb   : > { %v1216_v55 = vpop.eup %1215  ;;  %1235 = vtanh.f32 %v495_v50  ;;  %v412_v56 = vadd.f32 %v411_v54, %v312_v52  ;;  %v413_v57 = vpop.f32.mrb[7].mxu0 }
 0x1bc   : > { %v1218_v58 = vpop.eup %1217  ;;  %1237 = vtanh.f32 %v497_v53  ;;  %v500_v59 = vpop.f32.mrb[6].mxu1  ;;  %v414_v60 = vadd.f32 %v413_v57, %v312_v52 }
 0x1bd   : > { %v1220_v61 = vpop.eup %1219  ;;  %1239 = vtanh.f32 %v412_v56  ;;  %v501_v62 = vadd.f32 %v500_v59, %v312_v52  ;;  %v502_v63 = vpop.f32.mrb[7].mxu1 }
 0x1be   : > { %v1222_v0 = vpop.eup %1221  ;;  %1241 = vtanh.f32 %v414_v60  ;;  %v503_v1 = vadd.f32 %v502_v63, %v312_v52  ;;  %v540_v54 = vpop.permute.xlu0 %539 }
 0x1bf   : > { %v1224_v7 = vpop.eup %1223  ;;  %1243 = vtanh.f32 %v501_v62 }
 0x1c0   : > { %v1226_v8 = vpop.eup %1225  ;;  %1245 = vtanh.f32 %v503_v1  ;;  %v1084_v9 = vpack.c.bf16 %v1224_v7, %v1216_v55 }
 0x1c1   : > { %v1228_v10 = vpop.eup %1227  ;;  %v1082_v11 = vpack.c.bf16 %v1226_v8, %v1218_v58 }
 0x1c2   : > { %v1230_v12 = vpop.eup %1229  ;;  %v1092_v13 = vpack.c.bf16 %v1228_v10, %v1220_v61 }
 0x1c3   : > { %v1232_v14 = vpop.eup %1231  ;;  %1083 = vmatprep.subr.bf16.mxu0 %v1082_v11  ;;  %v1090_v15 = vpack.c.bf16 %v1230_v12, %v1222_v0 }
 0x1c4   : > { %v1234_v16 = vpop.eup %1233  ;;  %1085 = vmatpush1.bf16.msra.mxu0 %v1084_v9 }
 0x1c5   : > { %v1236_v17 = vpop.eup %1235  ;;  %1091 = vmatprep.subr.bf16.mxu1 %v1090_v15 }
 0x1c6   : > { %v1238_v18 = vpop.eup %1237  ;;  %1093 = vmatpush1.bf16.msra.mxu1 %v1092_v13 }
 0x1c7   : > { %v1240_v19 = vpop.eup %1239 }
 0x1c8   : > { %v1242_v20 = vpop.eup %1241  ;;  %v1088_v21 = vpack.c.bf16 %v1240_v19, %v1232_v14 }
 0x1c9   : > { %v1244_v22 = vpop.eup %1243  ;;  %v1086_v23 = vpack.c.bf16 %v1242_v20, %v1234_v16 }
 0x1ca   : > { %v1246_v24 = vpop.eup %1245  ;;  %v1096_v25 = vpack.c.bf16 %v1244_v22, %v1236_v17 }
 0x1cb   : > { %1087 = vmatprep.subr.bf16.mxu0 %v1086_v23  ;;  %v1094_v26 = vpack.c.bf16 %v1246_v24, %v1238_v18 }
 0x1cc   : > { %1089 = vmatpush1.bf16.msra.mxu0 %v1088_v21 }
 0x1cd   : > { %1095 = vmatprep.subr.bf16.mxu1 %v1094_v26 }
 0x1ce   : > { %1097 = vmatpush1.bf16.msra.mxu1 %v1096_v25 }
 0x1cf   : > { %1044 = vmatmul.mubr.msk.f32.vlgmr.msra.gmra.mrb[8].mxu0 %vm314_vm0, %v522_v27 }
 0x1d0   : > { %624 = vmatprep.mubr.f32.mxu0 %v1380_v6 }
 0x1d1   : > { %1048 = vmatmul.mubr.msk.f32.vlgmr.msra.gmra.mrb[8].mxu1 %vm314_vm0, %v522_v27 }
 0x1d2   : > { %713 = vmatprep.mubr.f32.mxu1 %v1380_v6 }
 0x1d3   : > { %1045 = vmatmul.mubr.msk.f32.gmra.mrb[10].mxu0 %vm314_vm0, %v523_v28 }
 0x1d4   : > { %630 = vmatprep.mubr.f32.mxu0 %v1380_v6 }
 0x1d5   : > { %1049 = vmatmul.mubr.msk.f32.gmra.mrb[10].mxu1 %vm314_vm0, %v523_v28 }
 0x1d6   : > { %719 = vmatprep.mubr.f32.mxu1 %v1380_v6 }
 0x1d7   : > { %1046 = vmatmul.mubr.msk.f32.gmra.mrb[12].mxu0 %vm314_vm0, %v524_v29 }
 0x1d8   : > { %636 = vmatprep.mubr.f32.mxu0 %v1380_v6 }
 0x1d9   : > { %1050 = vmatmul.mubr.msk.f32.gmra.mrb[12].mxu1 %vm314_vm0, %v524_v29  ;;  %v750_v29 = vld [vmem:[#allocation2 + $0x40] sm:$0xff] }
 0x1da   : > { %725 = vmatprep.mubr.f32.mxu1 %v1380_v6 }
 0x1db   : > { %1047 = vmatmul.mubr.msk.f32.gmra.mrb[14].mxu0 %vm314_vm0, %v525_v30 }
 0x1dc   : > { %830 = vmatprep.mubr.f32.mxu0 %v1380_v6 }
 0x1dd   : > { %1051 = vmatmul.mubr.msk.f32.gmra.mrb[14].mxu1 %vm314_vm0, %v525_v30  ;;  %v751_v30 = vld [vmem:[#allocation2 + $0x48] sm:$0xff] }
 0x1de   : > { %913 = vmatprep.mubr.f32.mxu1 %v1380_v6 }
 0x2a2   : > { %v620_v33 = vpop.f32.mrb[8].mxu0 }
 0x2a3   : > { %v621_v35 = vadd.f32 %v620_v33, %v528_v32  ;;  %v622_v36 = vpop.f32.mrb[9].mxu0  ;;  %v935_v33 = vpop.permute.xlu1 %934 }
 0x2a4   : > { %v709_v37 = vpop.f32.mrb[8].mxu1  ;;  %v623_v38 = vadd.f32 %v622_v36, %v528_v32 }
 0x2a5   : > { %1247 = vtanh.f32 %v621_v35  ;;  %v710_v39 = vadd.f32 %v709_v37, %v528_v32  ;;  %v711_v40 = vpop.f32.mrb[9].mxu1 }
 0x2a6   : > { %1249 = vtanh.f32 %v623_v38  ;;  %v712_v3 = vadd.f32 %v711_v40, %v528_v32  ;;  %v626_v41 = vpop.f32.mrb[10].mxu0  ;;  %v753_v32 = vld [vmem:[#allocation2 + $0x58] sm:$0xff] }
 0x2a7   : > { %1251 = vtanh.f32 %v710_v39  ;;  %v627_v4 = vadd.f32 %v626_v41, %v532_v34  ;;  %v628_v5 = vpop.f32.mrb[11].mxu0 }
 0x2a8   : > { %1253 = vtanh.f32 %v712_v3  ;;  %v715_v42 = vpop.f32.mrb[10].mxu1  ;;  %v629_v2 = vadd.f32 %v628_v5, %v532_v34 }
 0x2a9   : > { %1255 = vtanh.f32 %v627_v4  ;;  %v716_v44 = vadd.f32 %v715_v42, %v532_v34  ;;  %v717_v45 = vpop.f32.mrb[11].mxu1 }
 0x2aa   : > { %1257 = vtanh.f32 %v629_v2  ;;  %v718_v46 = vadd.f32 %v717_v45, %v532_v34  ;;  %v632_v47 = vpop.f32.mrb[12].mxu0 }
 0x2ab   : > { %1259 = vtanh.f32 %v716_v44  ;;  %v633_v48 = vadd.f32 %v632_v47, %v536_v43  ;;  %v634_v49 = vpop.f32.mrb[13].mxu0 }
 0x2ac   : > { %1261 = vtanh.f32 %v718_v46  ;;  %v721_v50 = vpop.f32.mrb[12].mxu1  ;;  %v635_v51 = vadd.f32 %v634_v49, %v536_v43 }
 0x2ad   : > { %1263 = vtanh.f32 %v633_v48  ;;  %v722_v52 = vadd.f32 %v721_v50, %v536_v43  ;;  %v723_v53 = vpop.f32.mrb[13].mxu1 }
 0x2ae   : > { %1265 = vtanh.f32 %v635_v51  ;;  %v724_v55 = vadd.f32 %v723_v53, %v536_v43  ;;  %v638_v56 = vpop.f32.mrb[14].mxu0 }
 0x2af   : > { %v1248_v57 = vpop.eup %1247  ;;  %1267 = vtanh.f32 %v722_v52  ;;  %v639_v58 = vadd.f32 %v638_v56, %v540_v54  ;;  %v640_v59 = vpop.f32.mrb[15].mxu0 }
 0x2b0   : > { %v1250_v60 = vpop.eup %1249  ;;  %1269 = vtanh.f32 %v724_v55  ;;  %v727_v61 = vpop.f32.mrb[14].mxu1  ;;  %v641_v62 = vadd.f32 %v640_v59, %v540_v54 }
 0x2b1   : > { %v1252_v63 = vpop.eup %1251  ;;  %1271 = vtanh.f32 %v639_v58  ;;  %v728_v0 = vadd.f32 %v727_v61, %v540_v54  ;;  %v729_v1 = vpop.f32.mrb[15].mxu1 }
 0x2b2   : > { %v1254_v7 = vpop.eup %1253  ;;  %1273 = vtanh.f32 %v641_v62  ;;  %v730_v8 = vadd.f32 %v729_v1, %v540_v54 }
 0x2b3   : > { %v1256_v9 = vpop.eup %1255  ;;  %1275 = vtanh.f32 %v728_v0 }
 0x2b4   : > { %v1258_v10 = vpop.eup %1257  ;;  %1277 = vtanh.f32 %v730_v8  ;;  %v1100_v11 = vpack.c.bf16 %v1256_v9, %v1248_v57 }
 0x2b5   : > { %v1260_v12 = vpop.eup %1259  ;;  %v1098_v13 = vpack.c.bf16 %v1258_v10, %v1250_v60 }
 0x2b6   : > { %v1262_v14 = vpop.eup %1261  ;;  %v1108_v15 = vpack.c.bf16 %v1260_v12, %v1252_v63 }
 0x2b7   : > { %v1264_v16 = vpop.eup %1263  ;;  %1099 = vmatprep.subr.bf16.mxu0 %v1098_v13  ;;  %v1106_v17 = vpack.c.bf16 %v1262_v14, %v1254_v7 }
 0x2b8   : > { %v1266_v18 = vpop.eup %1265  ;;  %1101 = vmatpush1.bf16.msra.mxu0 %v1100_v11 }
 0x2b9   : > { %v1268_v19 = vpop.eup %1267  ;;  %1107 = vmatprep.subr.bf16.mxu1 %v1106_v17 }
 0x2ba   : > { %v1270_v20 = vpop.eup %1269  ;;  %1109 = vmatpush1.bf16.msra.mxu1 %v1108_v15 }
 0x2bb   : > { %v1272_v21 = vpop.eup %1271 }
 0x2bc   : > { %v1274_v22 = vpop.eup %1273  ;;  %v1104_v23 = vpack.c.bf16 %v1272_v21, %v1264_v16 }
 0x2bd   : > { %v1276_v24 = vpop.eup %1275  ;;  %v1102_v25 = vpack.c.bf16 %v1274_v22, %v1266_v18 }
 0x2be   : > { %v1278_v26 = vpop.eup %1277  ;;  %v1112_v27 = vpack.c.bf16 %v1276_v24, %v1268_v19 }
 0x2bf   : > { %1103 = vmatprep.subr.bf16.mxu0 %v1102_v25  ;;  %v1110_v28 = vpack.c.bf16 %v1278_v26, %v1270_v20 }
 0x2c0   : > { %1105 = vmatpush1.bf16.msra.mxu0 %v1104_v23 }
 0x2c1   : > { %1111 = vmatprep.subr.bf16.mxu1 %v1110_v28 }
 0x2c2   : > { %1113 = vmatpush1.bf16.msra.mxu1 %v1112_v27 }
 0x2c3   : > { %1052 = vmatmul.mubr.msk.f32.vlgmr.msra.gmra.mrb[16].mxu0 %vm314_vm0, %v750_v29 }
 0x2c4   : > { %836 = vmatprep.mubr.f32.mxu0 %v1380_v6 }
 0x2c5   : > { %1056 = vmatmul.mubr.msk.f32.vlgmr.msra.gmra.mrb[16].mxu1 %vm314_vm0, %v750_v29 }
 0x2c6   : > { %919 = vmatprep.mubr.f32.mxu1 %v1380_v6 }
 0x2c7   : > { %1053 = vmatmul.mubr.msk.f32.gmra.mrb[18].mxu0 %vm314_vm0, %v751_v30 }
 0x2c8   : > { %840 = vmatprep.mubr.f32.mxu0 %v1380_v6 }
 0x2c9   : > { %1057 = vmatmul.mubr.msk.f32.gmra.mrb[18].mxu1 %vm314_vm0, %v751_v30 }
 0x2ca   : > { %923 = vmatprep.mubr.f32.mxu1 %v1380_v6 }
 0x2cb   : > { %1054 = vmatmul.mubr.msk.f32.gmra.mrb[20].mxu0 %vm314_vm0, %v752_v31 }
 0x2cc   : > { %844 = vmatprep.mubr.f32.mxu0 %v1380_v6 }
 0x2cd   : > { %1058 = vmatmul.mubr.msk.f32.gmra.mrb[20].mxu1 %vm314_vm0, %v752_v31 }
 0x2ce   : > { %927 = vmatprep.mubr.f32.mxu1 %v1380_v6 }
 0x2cf   : > { %1055 = vmatmul.mubr.msk.f32.gmra.mrb[22].mxu0 %vm314_vm0, %v753_v32 }
 0x2d1   : > { %1059 = vmatmul.mubr.msk.f32.gmra.mrb[22].mxu1 %vm314_vm0, %v753_v32 }
 0x396   : > { %v832_v34 = vpop.f32.mrb[16].mxu0 }
 0x397   : > { %v937_v35 = vadd.f32 %v935_v33, %v832_v34  ;;  %v834_v36 = vpop.f32.mrb[17].mxu0 }
 0x398   : > { %v915_v37 = vpop.f32.mrb[16].mxu1  ;;  %v938_v38 = vadd.f32 %v935_v33, %v834_v36 }
 0x399   : > { %v939_v39 = vadd.f32 %v935_v33, %v915_v37  ;;  %941 = vst [vmem:[%s177_s10] sm:$0xff] %v937_v35  ;;  %v917_v40 = vpop.f32.mrb[17].mxu1 }
 0x39a   : > { %942 = vst [vmem:[%s177_s10 + $0x8] sm:$0xff] %v938_v38  ;;  %v940_v6 = vadd.f32 %v935_v33, %v917_v40  ;;  %v838_v3 = vpop.f32.mrb[18].mxu0 }
 0x39b   : > { %943 = vst [vmem:[%s177_s10 + $0x10] sm:$0xff] %v939_v39  ;;  %v839_v41 = vpop.f32.mrb[19].mxu0 }
 0x39c   : > { %944 = vst [vmem:[%s177_s10 + $0x18] sm:$0xff] %v940_v6  ;;  %v921_v4 = vpop.f32.mrb[18].mxu1 }
 0x39d   : > { %v922_v5 = vpop.f32.mrb[19].mxu1 }
 0x39e   : > { %1320 = shalt.err (!%p1317_p7)
}
 0x39f   : > { %s1321_s28 = scalar_lea.hbm %s1582_s20, 512  ;;  %s1325_s4 = scalar_lea.hbm %s1627_s3, 1024 }
 0x3a0   : > { %p1322_p8 = scmp.ne.s32.totalorder %s1582_s20, %s1321_s28  ;;  %p1326_p1 = scmp.lt.u32.totalorder %s1582_s20, %s1627_s3 }
 0x3a1   : > { %p1327_p0 = scmp.lt.u32.totalorder %s1325_s4, %s1321_s28  ;;  %p1329_p6 = scmp.lt.u32.totalorder %s1321_s28, %s1582_s20 }
 0x3a2   : > { %p1323_p11 = pnand %p1322_p8, %p1638_p9 }
 0x3a3   : > { %p1328_p5 = por %p1327_p0, %p1326_p1 }
 0x3a4   : > { %p1324_p13 = pneg %p1323_p11 }
 0x3a5   : > { %p1330_p10 = por %p1329_p6, %p1328_p5 }
 0x3a7   : > { %p1331_p12 = pnand %p1330_p10, %p1324_p13 }
 0x3a9   : > { %1334 = shalt.err (!%p1331_p12)
}
 0x3aa   : > { %1118 = dma.vmem_to_hbm [thread:$0]  (%p1638_p9), %s1584_s11, 512, %s1582_s20, %s946_s16   ;;  %v842_v42 = vpop.f32.mrb[20].mxu0  ;;  %v925_v2 = vpop.f32.mrb[20].mxu1 }
 0x3ab   : > { %v843_v43 = vpop.f32.mrb[21].mxu0  ;;  %v926_v44 = vpop.f32.mrb[21].mxu1 }
 0x3ac   : > { %v846_v45 = vpop.f32.mrb[22].mxu0  ;;  %v929_v47 = vpop.f32.mrb[22].mxu1 }
 0x3ad   : > { %v847_v46 = vpop.f32.mrb[23].mxu0  ;;  %v930_v48 = vpop.f32.mrb[23].mxu1 }
 0x3ae PF: > { %p1130_p2 = scmp.ge.s32.totalorder %s1373_s15, 2  ;;  %s972_s7 = sand.u32 1, %s1361_s12  }
 0x3af   : > { %p1639_p3 = scmp.ne.s32.totalorder %s1632_s23, 0  ;;  %s973_s22 = scalar_lea.sflag [#allocation4], %s972_s7 }
 0x3b1   : > { %p1125_p4 = pnand %p1130_p2, %p1639_p3 }
 0x3b3   : > { %1356 = dma.done.wait (!%p1125_p4), %s973_s22, 512  }
 0x3b4   : > { %1358 = vsyncadd (!%p1125_p4), %s973_s22, 4294966784  ;;  %p14_p9 = scmp.ge.s32.totalorder %s1430_s18, 4   ;;  %s1640_s12 = smov %s1365_s13 }
 0x3b5   : > { %s1641_s13 = smov %s1369_s14  ;;  %s1642_s14 = smov %s1441_s21 }
 0x3b6   : > { %s1643_s15 = smov %s1430_s18  ;;  %16 = sbr.rel (!%p14_p9) target bundleno = 4 (0x4), region = 74 }
 0x3bd   :  { %978 = vsyncpa [#allocation3], 1 }
 0x3be   :  { %980 = vsyncpa [#allocation3 + $0x1], 1 }
 0x3bf   :  { %981 = vsyncpa [#allocation4], 1 }
 0x3c0   :  { %983 = vsyncpa [#allocation4 + $0x1], 1 }

</bundles_post_ra>
